<compile_context>
chip_gen: v7x
topology: tpu7x:2x2x1
jax: 0.10.0
libtpu: 0.0.40
codegen_flags: <defaults>
</compile_context>

<pallas_src>
import jax
import jax.numpy as jnp
from jax.experimental import pallas as pl
from jax.experimental.pallas import tpu as pltpu

C = 128  # channel count fixed by the module definition (Conv1d(128, 128, 1))


def make_fusion_kernel(bt, valid_len, padded_len):
    """Kernel factory: bt / valid_len / padded_len are static trace-time ints."""

    def fusion_kernel(x_ref, wt_ref, shift_ref, o_ref):
        # x_ref:     (1, bt*Lp, C) bf16  -- rows = batch-block images stacked on L
        # wt_ref:    (C, C)        bf16  -- (scale * W)^T, BN scale pre-folded
        # shift_ref: (1, C)        f32   -- folded BN shift (per output channel)
        # o_ref:     (1, bt, 1, C) f32
        x = x_ref[0]                                                   # (N, C) bf16
        # Conv1d(128,128,1,bias=False) + folded BN scale: one MXU matmul, f32 acc.
        y = jnp.dot(x, wt_ref[...], preferred_element_type=jnp.float32)  # (N, C)
        y = y + shift_ref[...]                                         # BN shift
        # LeakyReLU(negative_slope=0.2) as 2 VALU ops.
        y = jnp.maximum(y, 0.2 * y)

        # Free reshape: split the row (sublane) axis per image; lane axis (C)
        # and (8,128) tiling are unchanged because Lp % 8 == 0.
        y3 = y.reshape(bt, padded_len, C)                              # (bt, Lp, C)
        x3 = x.astype(jnp.float32).reshape(bt, padded_len, C)          # (bt, Lp, C)

        # Numerically-stable softmax over L per (image, channel); the attention
        # tensor itself is never materialized.
        m = jnp.max(y3, axis=1, keepdims=True)                         # (bt, 1, C)
        e = jnp.exp(y3 - m)                                            # (bt, Lp, C)
        if valid_len != padded_len:
            # Mask padded rows out of the denominator (built once per step).
            row = jax.lax.broadcasted_iota(jnp.int32, (bt, padded_len, C), 1)
            e = jnp.where(row < valid_len, e, 0.0)
        den = jnp.sum(e, axis=1, keepdims=True)                        # (bt, 1, C)
        # x is zero in padded rows, so the numerator needs no extra mask.
        num = jnp.sum(x3 * e, axis=1, keepdims=True)                   # (bt, 1, C)

        o_ref[0] = num / den                                           # one store

    return fusion_kernel


def feature_fusion_forward(x_nchw, w, bn_gamma, bn_beta, bn_mean, bn_var, eps=1e-5):
    B, Cin, H, W = x_nchw.shape
    assert Cin == C
    L = H * W
    Lp = pl.cdiv(L, 8) * 8  # channels sit on lanes, so rows only need 8-alignment

    # Fold BN (eval mode): scale into the conv weight, shift stays additive.
    inv_std = 1.0 / jnp.sqrt(bn_var.astype(jnp.float32) + eps)
    scale = bn_gamma.astype(jnp.float32) * inv_std                       # (C,)
    shift = (bn_beta.astype(jnp.float32)
             - bn_mean.astype(jnp.float32) * scale).reshape(1, C)        # (1, C) f32
    # Kernel computes y = X @ Wt with Wt[c, o] = scale[o] * w[o, c].
    wt_folded = (scale[:, None] * w.astype(jnp.float32)).T.astype(jnp.bfloat16)

    # Batch blocking: ~2 MiB bf16 blocks, but >= 2 grid steps when B >= 2 so the
    # "parallel" grid axis can be sharded across both v7x TensorCores.
    bytes_per_image = Lp * C * 2
    Bt = max(1, min(B, (2 << 20) // max(bytes_per_image, 1)))
    if B >= 2:
        Bt = min(Bt, pl.cdiv(B, 2))
    nb = pl.cdiv(B, Bt)
    B_pad = nb * Bt

    # Layout pass (single fused XLA op): NCL -> NLC (channels on lanes), pad,
    # cast to bf16, and group rows per batch block.
    x = x_nchw.reshape(B, C, L).transpose(0, 2, 1)                       # (B, L, C)
    x = jnp.pad(x, ((0, B_pad - B), (0, Lp - L), (0, 0)))
    x = x.astype(jnp.bfloat16).reshape(nb, Bt * Lp, C)

    kernel = make_fusion_kernel(Bt, L, Lp)

    out = pl.pallas_call(
        kernel,
        out_shape=jax.ShapeDtypeStruct((nb, Bt, 1, C), jnp.float32),
        grid_spec=pltpu.PrefetchScalarGridSpec(
            num_scalar_prefetch=0,
            grid=(nb,),
            in_specs=[
                pl.BlockSpec((1, Bt * Lp, C), lambda b: (b, 0, 0)),
                pl.BlockSpec((C, C), lambda b: (0, 0)),
                pl.BlockSpec((1, C), lambda b: (0, 0)),
            ],
            out_specs=pl.BlockSpec((1, Bt, 1, C), lambda b: (b, 0, 0, 0)),
        ),
        compiler_params=pltpu.CompilerParams(
            dimension_semantics=("parallel",),
            vmem_limit_bytes=32 << 20,
        ),
    )(x, wt_folded, shift)

    # torch.squeeze of (B, C, 1) -> (B, C) for B > 1 (shape note for B == 1 above).
    return out.reshape(B_pad, C)[:B]


def reference_forward(x_nchw, w, bn_gamma, bn_beta, bn_mean, bn_var, eps=1e-5):
    B, Cin, H, W = x_nchw.shape
    L = H * W
    x = x_nchw.reshape(B, Cin, L).astype(jnp.float32)
    y = jnp.einsum("oc,bcl->bol", w, x)
    scale = bn_gamma / jnp.sqrt(bn_var + eps)
    y = y * scale[None, :, None] + (bn_beta - bn_mean * scale)[None, :, None]
    y = jnp.where(y >= 0, y, 0.2 * y)
    att = jax.nn.softmax(y, axis=-1)
    return jnp.sum(x * att, axis=-1)


if __name__ == "__main__":
    key = jax.random.PRNGKey(0)
    k_x, k_w, k_g, k_b, k_m, k_v = jax.random.split(key, 6)

    B, H, W = 2, 16, 16
    x = jax.random.normal(k_x, (B, C, H, W), dtype=jnp.float32)

    # Deterministic synthetic parameters (Conv1d weight reshaped to (C_out, C_in)).
    w = 0.1 * jax.random.normal(k_w, (C, C), dtype=jnp.float32)
    bn_gamma = 1.0 + 0.1 * jax.random.normal(k_g, (C,), dtype=jnp.float32)
    bn_beta = 0.1 * jax.random.normal(k_b, (C,), dtype=jnp.float32)
    bn_mean = 0.1 * jax.random.normal(k_m, (C,), dtype=jnp.float32)
    bn_var = jnp.abs(1.0 + 0.1 * jax.random.normal(k_v, (C,), dtype=jnp.float32))

    out = feature_fusion_forward(x, w, bn_gamma, bn_beta, bn_mean, bn_var)
    out = jax.block_until_ready(out)

    ref = reference_forward(x, w, bn_gamma, bn_beta, bn_mean, bn_var)
    assert out.shape == (B, C)
    # Tolerance accounts for bf16 matmul operands and bf16-quantized x in the
    # attention-weighted numerator; reductions and divide are f32.
    assert jnp.allclose(out, ref, atol=5e-2, rtol=5e-2), float(jnp.max(jnp.abs(out - ref)))

    print("KERNEL_OK")
</pallas_src>

<mosaic_0001>
module attributes {stable_mosaic.version = 11 : i64} {
  func.func @fusion_kernel(%arg0: i32, %arg1: memref<1x256x128xbf16, #tpu.memory_space<vmem>>, %arg2: memref<128x128xbf16, #tpu.memory_space<vmem>>, %arg3: memref<1x128xf32, #tpu.memory_space<vmem>>, %arg4: memref<1x1x1x128xf32, #tpu.memory_space<vmem>>) attributes {dimension_semantics = [#tpu.dimension_semantics<parallel>], iteration_bounds = array<i64: 2>, scalar_prefetch = 0 : i64, scratch_operands = 0 : i64, tpu.core_type = #tpu.core_type<tc>, window_params = [{transform_indices = @transform_0, window_bounds = array<i64: 1, 256, 128>}, {pipeline_mode = #tpu.pipeline_mode<synchronous>, transform_indices = @transform_1, window_bounds = array<i64: 128, 128>}, {pipeline_mode = #tpu.pipeline_mode<synchronous>, transform_indices = @transform_2, window_bounds = array<i64: 1, 128>}, {transform_indices = @transform_3, window_bounds = array<i64: 1, 1, 1, 128>}]} {
    %c0 = arith.constant 0 : index
    %c0_0 = arith.constant 0 : index
    %c0_1 = arith.constant 0 : index
    %0 = vector.load %arg1[%c0, %c0_0, %c0_1] : memref<1x256x128xbf16, #tpu.memory_space<vmem>>, vector<1x256x128xbf16>
    %1 = vector.shape_cast %0 : vector<1x256x128xbf16> to vector<256x128xbf16>
    %c0_2 = arith.constant 0 : index
    %c0_3 = arith.constant 0 : index
    %2 = vector.load %arg2[%c0_2, %c0_3] : memref<128x128xbf16, #tpu.memory_space<vmem>>, vector<128x128xbf16>
    %cst = arith.constant dense<0.000000e+00> : vector<256x128xf32>
    %3 = tpu.matmul %1, %2, %cst {dimension_numbers = #tpu.dot_dimension_numbers<[1], [0], [0], [1], [0, 0, 1, 1], [], []>} : vector<256x128xbf16>, vector<128x128xbf16>, vector<256x128xf32> -> vector<256x128xf32>
    %c0_4 = arith.constant 0 : index
    %c0_5 = arith.constant 0 : index
    %4 = vector.load %arg3[%c0_4, %c0_5] : memref<1x128xf32, #tpu.memory_space<vmem>>, vector<1x128xf32>
    %5 = vector.broadcast %4 : vector<1x128xf32> to vector<256x128xf32>
    %6 = arith.addf %3, %5 : vector<256x128xf32>
    %cst_6 = arith.constant 2.000000e-01 : f32
    %7 = vector.broadcast %cst_6 : f32 to vector<256x128xf32>
    %8 = arith.mulf %7, %6 : vector<256x128xf32>
    %9 = arith.maximumf %6, %8 : vector<256x128xf32>
    %10 = vector.shape_cast %9 : vector<256x128xf32> to vector<1x256x128xf32>
    %11 = arith.extf %1 : vector<256x128xbf16> to vector<256x128xf32>
    %12 = vector.shape_cast %11 : vector<256x128xf32> to vector<1x256x128xf32>
    %cst_7 = arith.constant dense<0xFF800000> : vector<1x128xf32>
    %13 = vector.multi_reduction <maximumf>, %10, %cst_7 [1] : vector<1x256x128xf32> to vector<1x128xf32>
    %14 = vector.shape_cast %13 : vector<1x128xf32> to vector<1x1x128xf32>
    %15 = vector.broadcast %14 : vector<1x1x128xf32> to vector<1x256x128xf32>
    %16 = arith.subf %10, %15 : vector<1x256x128xf32>
    %17 = math.exp %16 : vector<1x256x128xf32>
    %cst_8 = arith.constant dense<0.000000e+00> : vector<1x128xf32>
    %18 = vector.multi_reduction <add>, %17, %cst_8 [1] : vector<1x256x128xf32> to vector<1x128xf32>
    %19 = vector.shape_cast %18 : vector<1x128xf32> to vector<1x1x128xf32>
    %20 = arith.mulf %12, %17 : vector<1x256x128xf32>
    %cst_9 = arith.constant dense<0.000000e+00> : vector<1x128xf32>
    %21 = vector.multi_reduction <add>, %20, %cst_9 [1] : vector<1x256x128xf32> to vector<1x128xf32>
    %22 = vector.shape_cast %21 : vector<1x128xf32> to vector<1x1x128xf32>
    %23 = arith.divf %22, %19 : vector<1x1x128xf32>
    %c0_10 = arith.constant 0 : index
    %c0_11 = arith.constant 0 : index
    %c0_12 = arith.constant 0 : index
    %c0_13 = arith.constant 0 : index
    %24 = vector.load %arg4[%c0_10, %c0_11, %c0_12, %c0_13] : memref<1x1x1x128xf32, #tpu.memory_space<vmem>>, vector<1x1x1x128xf32>
    %25 = vector.shape_cast %24 : vector<1x1x1x128xf32> to vector<1x1x128xf32>
    %26 = vector.shape_cast %23 : vector<1x1x128xf32> to vector<1x1x1x128xf32>
    tpu.vector_store %arg4[%c0_10, %c0_11, %c0_12, %c0_13], %26 {strides = array<i32>} : memref<1x1x1x128xf32, #tpu.memory_space<vmem>>, vector<1x1x1x128xf32>,
    return
  }
  func.func @transform_0(%arg0: i32) -> (i32, i32, i32) {
    %c0_i32 = arith.constant 0 : i32
    %c0_i32_0 = arith.constant 0 : i32
    %c0_i32_1 = arith.constant 0 : i32
    return %arg0, %c0_i32, %c0_i32_0 : i32, i32, i32
  }
  func.func @transform_1(%arg0: i32) -> (i32, i32) {
    %c0_i32 = arith.constant 0 : i32
    %c0_i32_0 = arith.constant 0 : i32
    %c0_i32_1 = arith.constant 0 : i32
    return %c0_i32, %c0_i32_0 : i32, i32
  }
  func.func @transform_2(%arg0: i32) -> (i32, i32) {
    %c0_i32 = arith.constant 0 : i32
    %c0_i32_0 = arith.constant 0 : i32
    %c0_i32_1 = arith.constant 0 : i32
    return %c0_i32, %c0_i32_0 : i32, i32
  }
  func.func @transform_3(%arg0: i32) -> (i32, i32, i32, i32) {
    %c0_i32 = arith.constant 0 : i32
    %c0_i32_0 = arith.constant 0 : i32
    %c0_i32_1 = arith.constant 0 : i32
    %c0_i32_2 = arith.constant 0 : i32
    return %arg0, %c0_i32, %c0_i32_0, %c0_i32_1 : i32, i32, i32, i32
  }
}

</mosaic_0001>

<bundles_post_ra>
// kernel: tpu_custom_call.1
= control target key start
LH: loop header
LB: loop body
LE: loop exit
PB: predicated region body
PF: predicated region fallthrough
CT: control target
= control target key end

     0   :  { %8 = vsyncpa [#allocation3], 0  ;;  %s2042_s0 = inlined_call_operand.hbm [shape: bf16[2,256,128], index: 0, kind: input, shape index: {}]   ;;  %s2043_s1 = inlined_call_operand.hbm [shape: bf16[128,128], index: 1, kind: input, shape index: {}]   ;;  %s2044_s2 = inlined_call_operand.vmem [shape: f32[1,128], index: 2, kind: input, shape index: {}]   ;;  %s2045_s3 = inlined_call_operand.hbm [shape: f32[2,1,1,128], index: 3, kind: output, shape index: {}]  }
   0x1   :  { %10 = vsyncpa [#allocation3 + $0x1], 0 }
   0x2   :  { %11 = vsyncpa [#allocation6], 0 }
   0x3   :  { %12 = vsyncpa [#allocation4], 0 }
   0x4   :  { %14 = vsyncpa [#allocation4 + $0x1], 0  ;;  %s1438_s12 = smov 0   ;;  %s1440_s13 = smov 0  }
   0x5   :  { %s1442_s14 = smov 0   ;;  %s1444_s15 = smov 0  }
   0x6 LB: > { %s1459_s16 = sadd.s32 4294967295, %s1411_s15   ;;  %s991_s17 = sadd.s32 4294967294, %s1411_s15   ;;  %s1411_s15 = sphi %s1444_s15, %s2098_s15   ;;  %s1407_s14 = sphi %s1442_s14, %s2097_s14   ;;  %s1403_s13 = sphi %s1440_s13, %s2096_s13   ;;  %s1399_s12 = sphi %s1438_s12, %s2095_s12  }
   0x7   : > { %p40_p0 = scmp.ne.s32.totalorder %s1403_s13, %s1399_s12  ;;  %p2046_p1 = scmp.eq.s32.totalorder %s1459_s16, 0 }
   0x8   : > { %p112_p3 = scmp.eq.s32.totalorder %s991_s17, 1  ;;  %p992_p5 = scmp.ge.s32.totalorder %s1411_s15, 1 }
   0x9   : > { %p1468_p4 = por %p2046_p1, %p40_p0  ;;  %p119_p7 = scmp.lt.s32.totalorder %s1411_s15, 3 }
   0xa   : > { %p1473_p6 = por %p112_p3, %p40_p0  ;;  %s1413_s21 = smov [#allocation5]  }
   0xb   : > { %s2059_s18 = scalar_select %p1468_p4, 1, 0 }
   0xc   : > { %s2060_s19 = scalar_select %p1473_p6, 1, 0 }
   0xd   : > { %p1478_p8 = pnand %p992_p5, %p119_p7  ;;  %s131_s22 = sshll.u32 %s1413_s21, 4  ;;  %s1482_s22 = int_to_ptr.vmem [resolvable:$true] %s131_s22 }
   0xe   : > { %s1494_s24 = sadd.s32 1, %s1411_s15   ;;  %s27_s25 = sadd.s32 1, %s1407_s14 }
   0xf   : > { %s2061_s20 = scalar_select %p1478_p8, 1, 0 }
  0x10   : > { %p1126_p9 = pneg %p1478_p8  ;;  %s24_s26 = ssub.s32 %s1411_s15, %s1494_s24 }
  0x11   : > { %s1283_s29 = scalar_lea.hbm %s2043_s1, 1024 }
  0x12   : > { %p1489_p11 = pnand %p1126_p9, %p2046_p1  ;;  %p1284_p12 = scmp.ne.s32.totalorder %s2043_s1, %s1283_s29 }
  0x13   : > { %p1290_p5 = scmp.lt.u32.totalorder %s1283_s29, %s2043_s1 }
  0x14   : > { %p1285_p13 = pneg %p1489_p11 }
  0x16   : > { %p1286_p0 = pnand %p1285_p13, %p1284_p12 }
  0x18   : > { %p1287_p3 = pneg %p1286_p0 }
  0x1a   : > { %p1292_p7 = pnand %p1290_p5, %p1287_p3 }
  0x1c   : > { %1295 = shalt.err (!%p1292_p7)
}
  0x1d   : > { %s1296_s7 = scalar_lea.vmem %s1482_s22, 1024  ;;  %p1304_p2 = scmp.lt.s32.totalorder %s1482_s22, %s1482_s22 }
  0x1e   : > { %p1297_p9 = scmp.ne.s32.totalorder %s1482_s22, %s1296_s7  ;;  %p1305_p6 = scmp.lt.s32.totalorder %s1296_s7, %s1296_s7 }
  0x20   : > { %p1299_p10 = pnand %p1297_p9, %p1285_p13  ;;  %p1306_p4 = por %p1305_p6, %p1304_p2 }
  0x22   : > { %p1300_p1 = pneg %p1299_p10 }
  0x24   : > { %p1307_p8 = pnand %p1306_p4, %p1300_p1 }
  0x26   : > { %1310 = shalt.err (!%p1307_p8)
}
  0x27   : > { %s1414_s8 = smov 64   ;;  %s1415_s9 = smov 4  }
  0x28   : > { %1129 = dma.hbm_to_vmem [thread:$0]  (!%p1489_p11), %s2043_s1, 1024, %s1482_s22, [#allocation6], %s1414_s8, %s1414_s8, %s1415_s9  }
  0x29   : > { %p25_p1 = scmp.eq.s32.totalorder %s24_s26, 0  ;;  %p34_p2 = scmp.ne.s32.totalorder %s1407_s14, %s1403_s13 }
  0x2a   : > { %p35_p4 = scmp.eq.s32.totalorder %s1411_s15, 0  ;;  %p1139_p6 = scmp.lt.s32.totalorder %s1411_s15, 2 }
  0x2b   : > { %s1528_s17 = scalar_select %p25_p1, %s1407_s14, %s27_s25  }
  0x2c   : > { %p36_p8 = por %p35_p4, %p34_p2  ;;  %p2063_p10 = scmp.eq.s32.totalorder %s1459_s16, 1 }
  0x2d   : > { %s148_s23 = sand.u32 1, %s1407_s14   ;;  %s1029_s27 = sshll.u32 %s1411_s15, 11 }
  0x2e   : > { %p1532_p12 = por %p2063_p10, %p34_p2  ;;  %s995_s28 = sshll.u32 %s148_s23, 7 }
  0x2f   : > { %s1541_s4 = scalar_lea.hbm %s2042_s0, %s1029_s27  ;;  %s152_s22 = scalar_lea.vmem [#allocation2], %s995_s28 }
  0x30   : > { %s159_s25 = sshll.u32 %s152_s22, 4  ;;  %p1543_p11 = pnand %p1139_p6, %p36_p8  ;;  %s1547_s25 = int_to_ptr.vmem [resolvable:$true] %s159_s25 }
  0x31   : > { %s1549_s5 = scalar_lea.sflag [#allocation3], %s148_s23  ;;  %s1311_s6 = scalar_lea.hbm %s1541_s4, 2048 }
  0x32   : > { %p1312_p13 = scmp.ne.s32.totalorder %s1541_s4, %s1311_s6  ;;  %p1313_p0 = pneg %p1543_p11 }
  0x33   : > { %s1316_s11 = scalar_lea.hbm %s2042_s0, 4096  ;;  %p1317_p7 = scmp.lt.u32.totalorder %s1541_s4, %s2042_s0 }
  0x34   : > { %p1314_p3 = pnand %p1313_p0, %p1312_p13  ;;  %p1318_p9 = scmp.lt.u32.totalorder %s1316_s11, %s1311_s6 }
  0x35   : > { %p1320_p2 = scmp.lt.u32.totalorder %s1311_s6, %s1541_s4 }
  0x36   : > { %p1315_p5 = pneg %p1314_p3  ;;  %p1319_p1 = por %p1318_p9, %p1317_p7 }
  0x38   : > { %p1321_p4 = por %p1320_p2, %p1319_p1 }
  0x3a   : > { %p1322_p6 = pnand %p1321_p4, %p1315_p5 }
  0x3c   : > { %1325 = shalt.err (!%p1322_p6)
}
  0x3d   : > { %s1326_s23 = scalar_lea.vmem %s1547_s25, 2048  ;;  %s1416_s29 = smov [#allocation2]  }
  0x3e   : > { %p1327_p8 = scmp.ne.s32.totalorder %s1547_s25, %s1326_s23  ;;  %s1331_s30 = sshll.u32 %s1416_s29, 4  ;;  %s1332_s30 = int_to_ptr.vmem [resolvable:$false] %s1331_s30 }
  0x3f   : > { %s1333_s22 = scalar_lea.vmem %s1332_s30, 4096  ;;  %p1334_p3 = scmp.lt.s32.totalorder %s1547_s25, %s1332_s30 }
  0x40   : > { %p1329_p10 = pnand %p1327_p8, %p1313_p0  ;;  %p1335_p7 = scmp.lt.s32.totalorder %s1333_s22, %s1326_s23 }
  0x42   : > { %p1330_p13 = pneg %p1329_p10  ;;  %p1336_p9 = por %p1335_p7, %p1334_p3 }
  0x44   : > { %p1337_p1 = pnand %p1336_p9, %p1330_p13 }
  0x46   : > { %1340 = shalt.err (!%p1337_p1)
}
  0x47   : > { %1133 = dma.hbm_to_vmem [thread:$0]  (!%p1543_p11), %s1541_s4, 2048, %s1547_s25, %s1549_s5, %s1414_s8, %s1414_s8, %s1415_s9  }
  0x48   : > { %p2066_p0 = scmp.ne.s32.totalorder %s2061_s20, 0 }
  0x4a   : > { %171 = sbr.rel (%p2066_p0) target bundleno = 513 (0x201), region = 32 }
  0x51   : > { %s1583_s6 = sand.u32 1, %s1403_s13   ;;  %p2067_p5 = scmp.ne.s32.totalorder %s2059_s18, 0 }
  0x52   : > { %s999_s7 = sshll.u32 %s1583_s6, 7  ;;  %s174_s10 = scalar_lea.sflag [#allocation3], %s1583_s6 }
  0x53   : > { %s1587_s11 = scalar_lea.vmem [#allocation2], %s999_s7 }
  0x54   : > { %1386 = dma.done.wait (%p2067_p5), %s174_s10, 2048  }
  0x55   : > { %1388 = vsyncadd (%p2067_p5), %s174_s10, 4294965248  ;;  %p2068_p11 = scmp.eq.s32.totalorder %s1459_s16, 0 }
  0x57   : > { %1390 = dma.done.wait (%p2068_p11), [#allocation6], 1024   ;;  %p2069_p2 = pmov %p2068_p11 }
  0x58   : > { %v1177_v0 = vld [vmem:[#allocation5] sm:$0xff]   ;;  %v1178_v1 = vld [vmem:[#allocation5 + $0x8] sm:$0xff]   ;;  %v1179_v2 = vld [vmem:[#allocation5 + $0x10] sm:$0xff]   ;;  %s1026_s8 = sshll.u32 %s1459_s16, 4  ;;  %s202_s9 = scalar_lea.vmem [#allocation7], %s1583_s6 }
  0x59   : > { %1392 = vsyncadd (%p2069_p2), [#allocation6], 4294966272  ;;  %1054 = vmatprep.subr.bf16.mxu0 %v1177_v0  ;;  %1102 = vmatprep.subr.bf16.mxu1 %v1177_v0  ;;  %v1180_v3 = vld [vmem:[#allocation5 + $0x18] sm:$0xff]   ;;  %v1598_v4 = vld [vmem:[%s1587_s11] sm:$0xff]   ;;  %s915_s4 = sshll.u32 %s202_s9, 4  ;;  %s1998_s5 = scalar_lea.hbm %s2045_s3, %s1026_s8  ;;  %s2000_s4 = int_to_ptr.vmem [resolvable:$true] %s915_s4 }
  0x5a   : > { %1055 = vmatpush3.bf16.msra.mxu0 %v1177_v0  ;;  %1110 = vmatpush3.bf16.msra.mxu1 %v1177_v0  ;;  %v1601_v5 = vld [vmem:[%s1587_s11 + $0x40] sm:$0xff]   ;;  %v1182_v7 = vld [vmem:[#allocation5 + $0x28] sm:$0xff]   ;;  %v1183_v8 = vld [vmem:[#allocation5 + $0x30] sm:$0xff]   ;;  %s903_s27 = scalar_lea.sflag [#allocation4], %s1583_s6  ;;  %s1341_s28 = scalar_lea.vmem %s2000_s4, 16 }
  0x5b   : > { %1056 = vmatprep.subr.bf16.mxu0 %v1178_v1  ;;  %1103 = vmatprep.subr.bf16.mxu1 %v1178_v1  ;;  %v1181_v6 = vld [vmem:[#allocation5 + $0x20] sm:$0xff]   ;;  %v1184_v9 = vld [vmem:[#allocation5 + $0x38] sm:$0xff]   ;;  %v1606_v10 = vld [vmem:[%s1587_s11 + $0x8] sm:$0xff]   ;;  %p1342_p4 = scmp.ne.s32.totalorder %s2000_s4, %s1341_s28  ;;  %s1417_s16 = smov [#allocation7]  }
  0x5c   : > { %1070 = vmatprep.mubr.bf16.mxu0 %v1598_v4  ;;  %1086 = vmatprep.mubr.bf16.mxu1 %v1601_v5  ;;  %v1609_v11 = vld [vmem:[%s1587_s11 + $0x48] sm:$0xff]   ;;  %v1612_v12 = vld [vmem:[%s1587_s11 + $0x10] sm:$0xff]   ;;  %v1621_v14 = vld [vmem:[%s1587_s11 + $0x18] sm:$0xff]   ;;  %s1345_s23 = sshll.u32 %s1417_s16, 4  ;;  %s1346_s23 = int_to_ptr.vmem [resolvable:$false] %s1345_s23 }
  0x5d   : > { %v1615_v13 = vld [vmem:[%s1587_s11 + $0x50] sm:$0xff]   ;;  %v1625_v15 = vld [vmem:[%s1587_s11 + $0x58] sm:$0xff]   ;;  %v1628_v16 = vld [vmem:[%s1587_s11 + $0x20] sm:$0xff]   ;;  %p1343_p6 = pnand %p1342_p4, %p1532_p12  ;;  %s1347_s29 = scalar_lea.vmem %s1346_s23, 32 }
  0x5e   : > { %1057 = vmatpush3.bf16.msra.mxu0 %v1178_v1  ;;  %1111 = vmatpush3.bf16.msra.mxu1 %v1178_v1  ;;  %2070 = vst [vmem:[#allocation11_spill] sm:$0xff] %v1625_v15  ;;  %v1631_v17 = vld [vmem:[%s1587_s11 + $0x60] sm:$0xff]   ;;  %v1637_v18 = vld [vmem:[%s1587_s11 + $0x28] sm:$0xff]   ;;  %v1644_v20 = vld [vmem:[%s1587_s11 + $0x30] sm:$0xff]   ;;  %p1348_p10 = scmp.lt.s32.totalorder %s2000_s4, %s1346_s23  ;;  %p1349_p13 = scmp.lt.s32.totalorder %s1347_s29, %s1341_s28 }
  0x5f   : > { %1058 = vmatprep.subr.bf16.mxu0 %v1179_v2  ;;  %1104 = vmatprep.subr.bf16.mxu1 %v1179_v2  ;;  %2071 = vst [vmem:[#allocation12_spill] sm:$0xff] %v1631_v17  ;;  %v1641_v19 = vld [vmem:[%s1587_s11 + $0x68] sm:$0xff]   ;;  %v1647_v21 = vld [vmem:[%s1587_s11 + $0x70] sm:$0xff]   ;;  %v1653_v22 = vld [vmem:[%s1587_s11 + $0x38] sm:$0xff]   ;;  %p1344_p8 = pneg %p1343_p6 }
  0x60   : > { %2072 = vst [vmem:[#allocation13_spill] sm:$0xff] %v1641_v19  ;;  %2073 = vst [vmem:[#allocation14_spill] sm:$0xff] %v1647_v21  ;;  %v1657_v23 = vld [vmem:[%s1587_s11 + $0x78] sm:$0xff]   ;;  %v1664_v28 = vld [vmem:[%s2044_s2] ss:$0 sm:$0xff]  ;;  %p1350_p3 = por %p1349_p13, %p1348_p10 }
  0x61   : > { %2074 = vst [vmem:[#allocation15_spill] sm:$0xff] %v1657_v23 }
  0x62   : > { %1059 = vmatpush3.bf16.msra.mxu0 %v1179_v2  ;;  %1112 = vmatpush3.bf16.msra.mxu1 %v1179_v2  ;;  %p1351_p7 = pnand %p1350_p3, %p1344_p8 }
  0x63   : > { %1060 = vmatprep.subr.bf16.mxu0 %v1180_v3  ;;  %1105 = vmatprep.subr.bf16.mxu1 %v1180_v3 }
  0x66   : > { %1061 = vmatpush3.bf16.msra.mxu0 %v1180_v3  ;;  %1113 = vmatpush3.bf16.msra.mxu1 %v1180_v3 }
  0x67   : > { %1062 = vmatprep.subr.bf16.mxu0 %v1181_v6  ;;  %1106 = vmatprep.subr.bf16.mxu1 %v1181_v6 }
  0x6a   : > { %1063 = vmatpush3.bf16.msra.mxu0 %v1181_v6  ;;  %1114 = vmatpush3.bf16.msra.mxu1 %v1181_v6 }
  0x6b   : > { %1064 = vmatprep.subr.bf16.mxu0 %v1182_v7  ;;  %1107 = vmatprep.subr.bf16.mxu1 %v1182_v7 }
  0x6e   : > { %1065 = vmatpush3.bf16.msra.mxu0 %v1182_v7  ;;  %1115 = vmatpush3.bf16.msra.mxu1 %v1182_v7 }
  0x6f   : > { %1066 = vmatprep.subr.bf16.mxu0 %v1183_v8  ;;  %1108 = vmatprep.subr.bf16.mxu1 %v1183_v8 }
  0x72   : > { %1067 = vmatpush3.bf16.msra.mxu0 %v1183_v8  ;;  %1116 = vmatpush3.bf16.msra.mxu1 %v1183_v8 }
  0x73   : > { %1068 = vmatprep.subr.bf16.mxu0 %v1184_v9  ;;  %1109 = vmatprep.subr.bf16.mxu1 %v1184_v9 }
  0x76   : > { %1069 = vmatpush3.bf16.msra.mxu0 %v1184_v9  ;;  %1117 = vmatpush3.bf16.msra.mxu1 %v1184_v9 }
  0x79   : > { %1071 = vmatmul.mubr.bf16.vlgmr.msra.gmra.mrb[0].mxu0 %v1606_v10  ;;  %1087 = vmatmul.mubr.bf16.vlgmr.msra.gmra.mrb[0].mxu1 %v1609_v11 }
  0x7a   : > { %1074 = vmatprep.mubr.bf16.mxu0 %v1612_v12  ;;  %1090 = vmatprep.mubr.bf16.mxu1 %v1615_v13 }
  0x81   : > { %1075 = vmatmul.mubr.bf16.gmra.mrb[4].mxu0 %v1621_v14  ;;  %1091 = vmatmul.mubr.bf16.gmra.mrb[4].mxu1 %v1625_v15 }
  0x82   : > { %1078 = vmatprep.mubr.bf16.mxu0 %v1628_v16  ;;  %1094 = vmatprep.mubr.bf16.mxu1 %v1631_v17 }
  0x89   : > { %1079 = vmatmul.mubr.bf16.gmra.mrb[8].mxu0 %v1637_v18  ;;  %1095 = vmatmul.mubr.bf16.gmra.mrb[8].mxu1 %v1641_v19 }
  0x8a   : > { %1082 = vmatprep.mubr.bf16.mxu0 %v1644_v20  ;;  %1098 = vmatprep.mubr.bf16.mxu1 %v1647_v21 }
  0x91   : > { %1083 = vmatmul.mubr.bf16.gmra.mrb[12].mxu0 %v1653_v22  ;;  %1099 = vmatmul.mubr.bf16.gmra.mrb[12].mxu1 %v1657_v23 }
 0x14c   : > { %v1072_v24 = vpop.f32.mrb[0].mxu0  ;;  %v1088_v25 = vpop.f32.mrb[0].mxu1 }
 0x14d   : > { %v437_v26 = vpop.f32.mrb[1].mxu0  ;;  %v501_v27 = vpop.f32.mrb[1].mxu1  ;;  %v446_v33 = vadd.f32 %v1072_v24, %v1664_v28  ;;  %v510_v62 = vadd.f32 %v1088_v25, %v1664_v28 }
 0x14e   : > { %v1073_v29 = vpop.f32.mrb[2].mxu0  ;;  %v1089_v30 = vpop.f32.mrb[2].mxu1  ;;  %v438_v34 = vadd.f32 %v1664_v28, %v437_v26  ;;  %v502_v2 = vadd.f32 %v1664_v28, %v501_v27 }
 0x14f   : > { %v440_v31 = vpop.f32.mrb[3].mxu0  ;;  %v504_v32 = vpop.f32.mrb[3].mxu1  ;;  %v449_v35 = vadd.f32 %v1073_v29, %v1664_v28  ;;  %v566_v39 = vmul.f32 0.2, %v446_v33  ;;  %v513_v9 = vadd.f32 %v1089_v30, %v1664_v28 }
 0x150   : > { %v441_v36 = vadd.f32 %v1664_v28, %v440_v31  ;;  %v564_v43 = vmul.f32 0.2, %v438_v34  ;;  %v505_v24 = vadd.f32 %v1664_v28, %v504_v32 }
 0x151   : > { %v567_v47 = vmul.f32 0.2, %v449_v35  ;;  %v1674_v55 = vmax.f32 %v446_v33, %v566_v39 }
 0x152   : > { %v565_v52 = vmul.f32 0.2, %v441_v36  ;;  %v1678_v58 = vmax.f32 %v438_v34, %v564_v43 }
 0x153   : > { %v1682_v61 = vmax.f32 %v449_v35, %v567_v47 }
 0x154   : > { %v1076_v37 = vpop.f32.mrb[4].mxu0  ;;  %v1092_v38 = vpop.f32.mrb[4].mxu1  ;;  %v1689_v1 = vmax.f32 %v441_v36, %v565_v52 }
 0x155   : > { %v462_v40 = vadd.f32 %v1076_v37, %v1664_v28  ;;  %v453_v41 = vpop.f32.mrb[5].mxu0  ;;  %v517_v42 = vpop.f32.mrb[5].mxu1  ;;  %v526_v33 = vadd.f32 %v1092_v38, %v1664_v28  ;;  %v582_v37 = vmul.f32 0.2, %v510_v62 }
 0x156   : > { %v454_v44 = vadd.f32 %v1664_v28, %v453_v41  ;;  %v1077_v45 = vpop.f32.mrb[6].mxu0  ;;  %v1093_v46 = vpop.f32.mrb[6].mxu1  ;;  %v518_v34 = vadd.f32 %v1664_v28, %v517_v42  ;;  %v581_v42 = vmul.f32 0.2, %v505_v24 }
 0x157   : > { %v570_v48 = vmul.f32 0.2, %v462_v40  ;;  %v465_v49 = vadd.f32 %v1077_v45, %v1664_v28  ;;  %v456_v50 = vpop.f32.mrb[7].mxu0  ;;  %v520_v51 = vpop.f32.mrb[7].mxu1  ;;  %v529_v32 = vadd.f32 %v1093_v46, %v1664_v28  ;;  %v586_v52 = vmul.f32 0.2, %v526_v33 }
 0x158   : > { %v568_v53 = vmul.f32 0.2, %v454_v44  ;;  %v457_v54 = vadd.f32 %v1664_v28, %v456_v50  ;;  %v521_v45 = vadd.f32 %v1664_v28, %v520_v51 }
 0x159   : > { %v1676_v56 = vmax.f32 %v462_v40, %v570_v48  ;;  %v571_v57 = vmul.f32 0.2, %v465_v49  ;;  %v583_v48 = vmul.f32 0.2, %v513_v9 }
 0x15a   : > { %v1680_v59 = vmax.f32 %v454_v44, %v568_v53  ;;  %v569_v60 = vmul.f32 0.2, %v457_v54  ;;  %v580_v44 = vmul.f32 0.2, %v502_v2  ;;  %v584_v53 = vmul.f32 0.2, %v518_v34 }
 0x15b   : > { %v662_v63 = vmax.f32 %v1674_v55, %v1676_v56  ;;  %v1687_v0 = vmax.f32 %v465_v49, %v571_v57  ;;  %v1714_v57 = vmax.f32 %v510_v62, %v582_v37  ;;  %v1724_v21 = vmax.f32 %v513_v9, %v583_v48 }
 0x15c   : > { %v660_v3 = vmax.f32 %v1678_v58, %v1680_v59  ;;  %v1694_v6 = vmax.f32 %v457_v54, %v569_v60  ;;  %v1080_v7 = vpop.f32.mrb[8].mxu0  ;;  %v1096_v8 = vpop.f32.mrb[8].mxu1  ;;  %v587_v60 = vmul.f32 0.2, %v529_v32  ;;  %v1719_v51 = vmax.f32 %v502_v2, %v580_v44 }
 0x15d   : > { %v663_v25 = vmax.f32 %v1682_v61, %v1687_v0  ;;  %v478_v26 = vadd.f32 %v1080_v7, %v1664_v28  ;;  %v469_v29 = vpop.f32.mrb[9].mxu0  ;;  %v533_v31 = vpop.f32.mrb[9].mxu1  ;;  %v1732_v2 = vmax.f32 %v518_v34, %v584_v53 }
 0x15e   : > { %v661_v27 = vmax.f32 %v1689_v1, %v1694_v6  ;;  %v470_v35 = vadd.f32 %v1664_v28, %v469_v29  ;;  %v1081_v36 = vpop.f32.mrb[10].mxu0  ;;  %v1097_v30 = vpop.f32.mrb[10].mxu1  ;;  %v1736_v9 = vmax.f32 %v529_v32, %v587_v60 }
 0x15f   : > { %v574_v39 = vmul.f32 0.2, %v478_v26  ;;  %v481_v40 = vadd.f32 %v1081_v36, %v1664_v28  ;;  %v472_v41 = vpop.f32.mrb[11].mxu0  ;;  %v536_v43 = vpop.f32.mrb[11].mxu1  ;;  %v585_v36 = vmul.f32 0.2, %v521_v45 }
 0x160   : > { %v572_v47 = vmul.f32 0.2, %v470_v35  ;;  %v473_v38 = vadd.f32 %v1664_v28, %v472_v41 }
 0x161   : > { %v1710_v49 = vmax.f32 %v478_v26, %v574_v39  ;;  %v575_v50 = vmul.f32 0.2, %v481_v40 }
 0x162   : > { %v1712_v54 = vmax.f32 %v470_v35, %v572_v47  ;;  %v573_v46 = vmul.f32 0.2, %v473_v38  ;;  %v1726_v35 = vmax.f32 %v505_v24, %v581_v42  ;;  %v1730_v47 = vmax.f32 %v526_v33, %v586_v52 }
 0x163   : > { %v666_v7 = vmax.f32 %v662_v63, %v1710_v49  ;;  %v1717_v29 = vmax.f32 %v481_v40, %v575_v50  ;;  %v542_v24 = vadd.f32 %v1096_v8, %v1664_v28  ;;  %v534_v33 = vadd.f32 %v1664_v28, %v533_v31 }
 0x164   : > { %v664_v41 = vmax.f32 %v660_v3, %v1712_v54  ;;  %v1722_v26 = vmax.f32 %v473_v38, %v573_v46  ;;  %v1084_v39 = vpop.f32.mrb[12].mxu0  ;;  %v1100_v23 = vpop.f32.mrb[12].mxu1  ;;  %v545_v52 = vadd.f32 %v1097_v30, %v1664_v28  ;;  %v537_v8 = vadd.f32 %v1664_v28, %v536_v43 }
 0x165   : > { %v667_v62 = vmax.f32 %v663_v25, %v1717_v29  ;;  %v494_v37 = vadd.f32 %v1084_v39, %v1664_v28  ;;  %v485_v63 = vpop.f32.mrb[13].mxu0  ;;  %v549_v40 = vpop.f32.mrb[13].mxu1  ;;  %v1740_v39 = vmax.f32 %v521_v45, %v585_v36  ;;  %v558_v60 = vadd.f32 %v1100_v23, %v1664_v28 }
 0x166   : > { %v665_v3 = vmax.f32 %v661_v27, %v1722_v26  ;;  %v486_v44 = vadd.f32 %v1664_v28, %v485_v63  ;;  %v1085_v38 = vpop.f32.mrb[14].mxu0  ;;  %v1101_v50 = vpop.f32.mrb[14].mxu1  ;;  %v550_v45 = vadd.f32 %v1664_v28, %v549_v40  ;;  %v590_v36 = vmul.f32 0.2, %v542_v24 }
 0x167   : > { %v578_v48 = vmul.f32 0.2, %v494_v37  ;;  %v497_v25 = vadd.f32 %v1085_v38, %v1664_v28  ;;  %v488_v42 = vpop.f32.mrb[15].mxu0  ;;  %v552_v46 = vpop.f32.mrb[15].mxu1  ;;  %v588_v30 = vmul.f32 0.2, %v534_v33 }
 0x168   : > { %v576_v34 = vmul.f32 0.2, %v486_v44  ;;  %v489_v27 = vadd.f32 %v1664_v28, %v488_v42  ;;  %v561_v42 = vadd.f32 %v1101_v50, %v1664_v28  ;;  %v553_v23 = vadd.f32 %v1664_v28, %v552_v46 }
 0x169   : > { %v1745_v53 = vmax.f32 %v494_v37, %v578_v48  ;;  %v579_v32 = vmul.f32 0.2, %v497_v25  ;;  %v591_v43 = vmul.f32 0.2, %v545_v52  ;;  %v594_v40 = vmul.f32 0.2, %v558_v60 }
 0x16a   : > { %v1749_v63 = vmax.f32 %v486_v44, %v576_v34  ;;  %v577_v38 = vmul.f32 0.2, %v489_v27  ;;  %v589_v17 = vmul.f32 0.2, %v537_v8  ;;  %v1764_v50 = vmax.f32 %v542_v24, %v590_v36 }
 0x16b   : > { %v670_v31 = vmax.f32 %v666_v7, %v1745_v53  ;;  %v1753_v19 = vmax.f32 %v497_v25, %v579_v32  ;;  %v592_v32 = vmul.f32 0.2, %v550_v45  ;;  %v1768_v28 = vmax.f32 %v534_v33, %v588_v30 }
 0x16c   : > { %v668_v37 = vmax.f32 %v664_v41, %v1749_v63  ;;  %v1757_v48 = vmax.f32 %v489_v27, %v577_v38  ;;  %v595_v38 = vmul.f32 0.2, %v561_v42  ;;  %v1772_v15 = vmax.f32 %v545_v52, %v591_v43 }
 0x16d   : > { %v674_v44 = vmax.f32 %v670_v31, %v1714_v57  ;;  %v671_v34 = vmax.f32 %v667_v62, %v1753_v19  ;;  %v593_v31 = vmul.f32 0.2, %v553_v23  ;;  %v1778_v36 = vmax.f32 %v537_v8, %v589_v17 }
 0x16e   : > { %v672_v7 = vmax.f32 %v668_v37, %v1719_v51  ;;  %v669_v25 = vmax.f32 %v665_v3, %v1757_v48  ;;  %v1774_v37 = vmax.f32 %v558_v60, %v594_v40 }
 0x16f   : > { %v675_v41 = vmax.f32 %v671_v34, %v1724_v21  ;;  %v678_v27 = vmax.f32 %v674_v44, %v1730_v47  ;;  %v1780_v34 = vmax.f32 %v550_v45, %v592_v32  ;;  %v1789_v43 = vmax.f32 %v553_v23, %v593_v31 }
 0x170   : > { %v673_v46 = vmax.f32 %v669_v25, %v1726_v35  ;;  %v676_v62 = vmax.f32 %v672_v7, %v1732_v2  ;;  %v1785_v7 = vmax.f32 %v561_v42, %v595_v38 }
 0x171   : > { %v682_v3 = vmax.f32 %v678_v27, %v1764_v50  ;;  %v679_v24 = vmax.f32 %v675_v41, %v1736_v9 }
 0x172   : > { %v680_v33 = vmax.f32 %v676_v62, %v1768_v28  ;;  %v677_v30 = vmax.f32 %v673_v46, %v1740_v39 }
 0x173   : > { %v686_v44 = vmax.f32 %v682_v3, %v1774_v37  ;;  %v683_v52 = vmax.f32 %v679_v24, %v1772_v15 }
 0x174   : > { %v684_v60 = vmax.f32 %v680_v33, %v1780_v34  ;;  %v681_v40 = vmax.f32 %v677_v30, %v1778_v36 }
 0x175   : > { %v687_v17 = vmax.f32 %v683_v52, %v1785_v7 }
 0x176   : > { %v685_v8 = vmax.f32 %v681_v40, %v1789_v43  ;;  %v629_v40 = vunpack.c.h.bf16 %v1598_v4 }
 0x177   : > { %v689_v45 = vmax.f32 %v686_v44, %v687_v17 }
 0x178   : > { %v688_v25 = vmax.f32 %v684_v60, %v685_v8  ;;  %v631_v60 = vunpack.c.h.bf16 %v1606_v10 }
 0x17a   : > { %v690_v32 = vmax.f32 %v688_v25, %v689_v45  ;;  %v628_v25 = vunpack.c.l.bf16 %v1598_v4 }
 0x17c   : > { %v691_v41 = vrot.slane %v690_v32, 4 }
 0x17e   : > { %v692_v27 = vmax.f32 %v690_v32, %v691_v41  ;;  %v630_v41 = vunpack.c.l.bf16 %v1606_v10 }
 0x180   : > { %v693_v46 = vrot.slane %v692_v27, 2 }
 0x182   : > { %v694_v42 = vmax.f32 %v692_v27, %v693_v46  ;;  %v644_v46 = vunpack.c.l.bf16 %v1601_v5 }
 0x184   : > { %v695_v38 = vrot.slane %v694_v42, 1 }
 0x186   : > { %v1794_v62 = vmax.f32 %v694_v42, %v695_v38 }
 0x188   : > { %v697_v23 = vsub.f32 %v1678_v58, %v1794_v62  ;;  %v698_v31 = vsub.f32 %v1689_v1, %v1794_v62  ;;  %v699_v3 = vsub.f32 %v1674_v55, %v1794_v62  ;;  %v700_v24 = vsub.f32 %v1682_v61, %v1794_v62 }
 0x189   : > { %v701_v33 = vsub.f32 %v1680_v59, %v1794_v62  ;;  %v702_v30 = vsub.f32 %v1694_v6, %v1794_v62  ;;  %v703_v44 = vsub.f32 %v1676_v56, %v1794_v62  ;;  %v704_v58 = vsub.f32 %v1687_v0, %v1794_v62 }
 0x18a   : > { %v705_v1 = vsub.f32 %v1712_v54, %v1794_v62  ;;  %v706_v55 = vsub.f32 %v1722_v26, %v1794_v62  ;;  %v707_v61 = vsub.f32 %v1710_v49, %v1794_v62  ;;  %v708_v59 = vsub.f32 %v1717_v29, %v1794_v62 }
 0x18b   : > { %v709_v6 = vsub.f32 %v1749_v63, %v1794_v62  ;;  %v710_v56 = vsub.f32 %v1757_v48, %v1794_v62  ;;  %v711_v0 = vsub.f32 %v1745_v53, %v1794_v62  ;;  %v712_v54 = vsub.f32 %v1753_v19, %v1794_v62 }
 0x18c   : > { %v713_v26 = vsub.f32 %v1719_v51, %v1794_v62  ;;  %v714_v49 = vsub.f32 %v1726_v35, %v1794_v62  ;;  %v715_v29 = vsub.f32 %v1714_v57, %v1794_v62  ;;  %v716_v63 = vsub.f32 %v1724_v21, %v1794_v62 }
 0x18d   : > { %v717_v48 = vsub.f32 %v1732_v2, %v1794_v62  ;;  %v718_v52 = vsub.f32 %v1740_v39, %v1794_v62  ;;  %v729_v42 = vmul.f32 1.442695, %v697_v23  ;;  %v731_v38 = vmul.f32 1.442695, %v698_v31 }
 0x18e   : > { %v733_v8 = vmul.f32 1.442695, %v699_v3  ;;  %v735_v17 = vmul.f32 1.442695, %v700_v24  ;;  %v737_v45 = vmul.f32 1.442695, %v701_v33  ;;  %v645_v23 = vunpack.c.h.bf16 %v1601_v5 }
 0x18f   : > { %1217 = vpow2.f32 %v729_v42  ;;  %v739_v32 = vmul.f32 1.442695, %v702_v30  ;;  %v741_v27 = vmul.f32 1.442695, %v703_v44  ;;  %v743_v31 = vmul.f32 1.442695, %v704_v58 }
 0x190   : > { %1219 = vpow2.f32 %v731_v38  ;;  %v745_v4 = vmul.f32 1.442695, %v705_v1  ;;  %v632_v33 = vunpack.c.l.bf16 %v1612_v12  ;;  %v633_v30 = vunpack.c.h.bf16 %v1612_v12 }
 0x191   : > { %1221 = vpow2.f32 %v733_v8  ;;  %v747_v10 = vmul.f32 1.442695, %v706_v55  ;;  %v634_v44 = vunpack.c.l.bf16 %v1621_v14  ;;  %v635_v8 = vunpack.c.h.bf16 %v1621_v14 }
 0x192   : > { %1223 = vpow2.f32 %v735_v17  ;;  %v749_v42 = vmul.f32 1.442695, %v707_v61  ;;  %v636_v17 = vunpack.c.l.bf16 %v1628_v16  ;;  %v751_v38 = vmul.f32 1.442695, %v708_v59 }
 0x193   : > { %1225 = vpow2.f32 %v737_v45  ;;  %v637_v1 = vunpack.c.h.bf16 %v1628_v16  ;;  %v638_v45 = vunpack.c.l.bf16 %v1637_v18  ;;  %v753_v12 = vmul.f32 1.442695, %v709_v6 }
 0x194   : > { %1227 = vpow2.f32 %v739_v32  ;;  %v639_v55 = vunpack.c.h.bf16 %v1637_v18  ;;  %v640_v32 = vunpack.c.l.bf16 %v1644_v20  ;;  %v755_v14 = vmul.f32 1.442695, %v710_v56 }
 0x195   : > { %1229 = vpow2.f32 %v741_v27  ;;  %v641_v61 = vunpack.c.h.bf16 %v1644_v20  ;;  %v642_v58 = vunpack.c.l.bf16 %v1653_v22  ;;  %v757_v16 = vmul.f32 1.442695, %v711_v0 }
 0x196   : > { %1231 = vpow2.f32 %v743_v31  ;;  %v643_v31 = vunpack.c.h.bf16 %v1653_v22  ;;  %v759_v6 = vmul.f32 1.442695, %v712_v54  ;;  %v763_v53 = vmul.f32 1.442695, %v714_v49 }
 0x197   : > { %1233 = vpow2.f32 %v745_v4  ;;  %v765_v19 = vmul.f32 1.442695, %v715_v29  ;;  %v769_v35 = vmul.f32 1.442695, %v717_v48  ;;  %v2075_v21 = vsub.f32 %v1730_v47, %v1794_v62 }
 0x198   : > { %1235 = vpow2.f32 %v747_v10  ;;  %v761_v10 = vmul.f32 1.442695, %v713_v26  ;;  %v767_v26 = vmul.f32 1.442695, %v716_v63  ;;  %v2077_v39 = vsub.f32 %v1768_v28, %v1794_v62 }
 0x199   : > { %v1218_v27 = vpop.eup %1217  ;;  %1237 = vpow2.f32 %v749_v42  ;;  %v773_v63 = vmul.f32 1.442695, %v2075_v21  ;;  %v2085_v21 = vld [vmem:[#allocation11_spill] sm:$0xff] }
 0x19a   : > { %v1220_v59 = vpop.eup %1219  ;;  %1239 = vpow2.f32 %v751_v38  ;;  %v830_v4 = vmul.f32 %v1218_v27, %v628_v25 }
 0x19b   : > { %v1222_v56 = vpop.eup %1221  ;;  %1241 = vpow2.f32 %v753_v12  ;;  %v793_v42 = vadd.f32 %v1220_v59, %v1218_v27  ;;  %v831_v24 = vmul.f32 %v1220_v59, %v629_v40 }
 0x19c   : > { %v1224_v3 = vpop.eup %1223  ;;  %1243 = vpow2.f32 %v755_v14  ;;  %v832_v0 = vmul.f32 %v1222_v56, %v630_v41 }
 0x19d   : > { %v1226_v54 = vpop.eup %1225  ;;  %1245 = vpow2.f32 %v757_v16  ;;  %v794_v25 = vadd.f32 %v1222_v56, %v793_v42  ;;  %v833_v38 = vmul.f32 %v1224_v3, %v631_v60  ;;  %v862_v12 = vadd.f32 %v831_v24, %v830_v4 }
 0x19e   : > { %v1228_v51 = vpop.eup %1227  ;;  %1247 = vpow2.f32 %v759_v6  ;;  %v834_v49 = vmul.f32 %v1226_v54, %v632_v33  ;;  %v771_v60 = vmul.f32 1.442695, %v718_v52  ;;  %v777_v52 = vmul.f32 1.442695, %v2077_v39 }
 0x19f   : > { %v1230_v40 = vpop.eup %1229  ;;  %1249 = vpow2.f32 %v761_v10  ;;  %v795_v57 = vadd.f32 %v1224_v3, %v794_v25  ;;  %v835_v29 = vmul.f32 %v1228_v51, %v633_v30  ;;  %v863_v41 = vadd.f32 %v862_v12, %v832_v0 }
 0x1a0   : > { %v1232_v14 = vpop.eup %1231  ;;  %1251 = vpow2.f32 %v763_v53  ;;  %v836_v24 = vmul.f32 %v1230_v40, %v634_v44  ;;  %v2076_v3 = vsub.f32 %v1736_v9, %v1794_v62  ;;  %v2079_v9 = vsub.f32 %v1764_v50, %v1794_v62 }
 0x1a1   : > { %v1234_v27 = vpop.eup %1233  ;;  %1253 = vpow2.f32 %v765_v19  ;;  %v796_v2 = vadd.f32 %v1226_v54, %v795_v57  ;;  %v837_v48 = vmul.f32 %v1232_v14, %v635_v8  ;;  %v864_v33 = vadd.f32 %v863_v41, %v833_v38 }
 0x1a2   : > { %v1236_v16 = vpop.eup %1235  ;;  %1255 = vpow2.f32 %v767_v26  ;;  %v775_v30 = vmul.f32 1.442695, %v2076_v3  ;;  %v838_v59 = vmul.f32 %v1234_v27, %v636_v17  ;;  %v2078_v8 = vsub.f32 %v1778_v36, %v1794_v62 }
 0x1a3   : > { %v1238_v6 = vpop.eup %1237  ;;  %1257 = vpow2.f32 %v769_v35  ;;  %v797_v47 = vadd.f32 %v1228_v51, %v796_v2  ;;  %v839_v44 = vmul.f32 %v1236_v16, %v637_v1  ;;  %v865_v4 = vadd.f32 %v864_v33, %v834_v49 }
 0x1a4   : > { %v1240_v56 = vpop.eup %1239  ;;  %1259 = vpow2.f32 %v771_v60  ;;  %v779_v10 = vmul.f32 1.442695, %v2078_v8  ;;  %v781_v42 = vmul.f32 1.442695, %v2079_v9  ;;  %v840_v28 = vmul.f32 %v1238_v6, %v638_v45 }
 0x1a5   : > { %v1242_v53 = vpop.eup %1241  ;;  %1261 = vpow2.f32 %v773_v63  ;;  %v798_v17 = vadd.f32 %v1230_v40, %v797_v47  ;;  %v841_v1 = vmul.f32 %v1240_v56, %v639_v55  ;;  %v866_v19 = vadd.f32 %v865_v4, %v835_v29 }
 0x1a6   : > { %v1244_v0 = vpop.eup %1243  ;;  %1263 = vpow2.f32 %v775_v30  ;;  %v2080_v36 = vsub.f32 %v1772_v15, %v1794_v62  ;;  %v2081_v50 = vsub.f32 %v1780_v34, %v1794_v62  ;;  %v842_v45 = vmul.f32 %v1242_v53, %v640_v32 }
 0x1a7   : > { %v1932_v38 = vpop.eup %1245  ;;  %1265 = vpow2.f32 %v777_v52  ;;  %v799_v12 = vadd.f32 %v1232_v14, %v798_v17  ;;  %v1936_v18 = vmul.f32 %v1244_v0, %v641_v61  ;;  %v867_v55 = vadd.f32 %v866_v19, %v836_v24 }
 0x1a8   : > { %v783_v54 = vmul.f32 1.442695, %v2080_v36  ;;  %v785_v25 = vmul.f32 1.442695, %v2081_v50  ;;  %v1938_v51 = vpop.eup %1247  ;;  %1267 = vpow2.f32 %v779_v10  ;;  %v2082_v15 = vsub.f32 %v1789_v43, %v1794_v62  ;;  %v2090_v10 = vld [vmem:[#allocation13_spill] sm:$0xff] }
 0x1a9   : > { %v2083_v26 = vsub.f32 %v1774_v37, %v1794_v62  ;;  %v1949_v35 = vmul.f32 %v1932_v38, %v642_v58  ;;  %v1951_v20 = vpop.eup %1249  ;;  %1269 = vpow2.f32 %v781_v42  ;;  %v800_v61 = vadd.f32 %v1234_v27, %v799_v12 }
 0x1aa   : > { %v787_v34 = vmul.f32 1.442695, %v2082_v15  ;;  %v1956_v49 = vmul.f32 %v1938_v51, %v643_v31  ;;  %v868_v43 = vadd.f32 %v867_v55, %v837_v48  ;;  %v1958_v40 = vpop.eup %1251  ;;  %v649_v37 = vunpack.c.h.bf16 %v1615_v13 }
 0x1ab   : > { %v789_v32 = vmul.f32 1.442695, %v2083_v26  ;;  %1271 = vpow2.f32 %v783_v54  ;;  %v2084_v57 = vsub.f32 %v1785_v7, %v1794_v62  ;;  %v846_v29 = vmul.f32 %v1951_v20, %v644_v46  ;;  %v1254_v41 = vpop.eup %1253  ;;  %v2091_v54 = vld [vmem:[#allocation14_spill] sm:$0xff] }
 0x1ac   : > { %1273 = vpow2.f32 %v785_v25  ;;  %v801_v22 = vadd.f32 %v1236_v16, %v800_v61  ;;  %v847_v31 = vmul.f32 %v1958_v40, %v645_v23  ;;  %v869_v14 = vadd.f32 %v868_v43, %v838_v59  ;;  %v1256_v60 = vpop.eup %1255  ;;  %v2088_v16 = vld [vmem:[#allocation12_spill] sm:$0xff] }
 0x1ad   : > { %v791_v58 = vmul.f32 1.442695, %v2084_v57  ;;  %v650_v63 = vunpack.c.l.bf16 %v2085_v21  ;;  %v651_v24 = vunpack.c.h.bf16 %v2085_v21  ;;  %1275 = vpow2.f32 %v787_v34  ;;  %v1258_v27 = vpop.eup %1257  ;;  %v2092_v34 = vld [vmem:[#allocation15_spill] sm:$0xff] }
 0x1ae   : > { %v2086_v7 = vunpack.c.l.bf16 %v1609_v11  ;;  %1277 = vpow2.f32 %v789_v32  ;;  %v802_v46 = vadd.f32 %v1238_v6, %v801_v22  ;;  %v2087_v2 = vunpack.c.h.bf16 %v1609_v11  ;;  %v1260_v5 = vpop.eup %1259 }
 0x1af   : > { %v870_v33 = vadd.f32 %v869_v14, %v839_v44  ;;  %v652_v23 = vunpack.c.l.bf16 %v2088_v16  ;;  %1279 = vpow2.f32 %v791_v58  ;;  %v2089_v3 = vunpack.c.l.bf16 %v1615_v13  ;;  %v1262_v39 = vpop.eup %1261 }
 0x1b0   : > { %v848_v62 = vmul.f32 %v1254_v41, %v2086_v7  ;;  %v849_v48 = vmul.f32 %v1256_v60, %v2087_v2  ;;  %v653_v52 = vunpack.c.h.bf16 %v2088_v16  ;;  %v803_v59 = vadd.f32 %v1240_v56, %v802_v46  ;;  %v1264_v8 = vpop.eup %1263 }
 0x1b1   : > { %v850_v30 = vmul.f32 %v1258_v27, %v2089_v3  ;;  %v851_v47 = vmul.f32 %v1260_v5, %v649_v37  ;;  %v871_v4 = vadd.f32 %v870_v33, %v840_v28  ;;  %v654_v6 = vunpack.c.l.bf16 %v2090_v10  ;;  %v1266_v11 = vpop.eup %1265 }
 0x1b2   : > { %v852_v9 = vmul.f32 %v1262_v39, %v650_v63  ;;  %v655_v44 = vunpack.c.h.bf16 %v2090_v10  ;;  %v804_v42 = vadd.f32 %v1242_v53, %v803_v59  ;;  %v853_v17 = vmul.f32 %v1264_v8, %v651_v24  ;;  %v1268_v36 = vpop.eup %1267 }
 0x1b3   : > { %v872_v19 = vadd.f32 %v871_v4, %v841_v1  ;;  %v656_v13 = vunpack.c.l.bf16 %v2091_v54  ;;  %v854_v50 = vmul.f32 %v1266_v11, %v652_v23  ;;  %v1270_v25 = vpop.eup %1269  ;;  %v657_v12 = vunpack.c.h.bf16 %v2091_v54 }
 0x1b4   : > { %v805_v56 = vadd.f32 %v1244_v0, %v804_v42  ;;  %v855_v55 = vmul.f32 %v1268_v36, %v653_v52  ;;  %v658_v26 = vunpack.c.l.bf16 %v2092_v34  ;;  %v856_v32 = vmul.f32 %v1270_v25, %v654_v6 }
 0x1b5   : > { %v873_v28 = vadd.f32 %v872_v19, %v842_v45  ;;  %v1272_v15 = vpop.eup %1271  ;;  %v659_v43 = vunpack.c.h.bf16 %v2092_v34 }
 0x1b6   : > { %v1274_v61 = vpop.eup %1273  ;;  %v806_v53 = vadd.f32 %v1932_v38, %v805_v56  ;;  %v857_v1 = vmul.f32 %v1272_v15, %v655_v44 }
 0x1b7   : > { %v874_v37 = vadd.f32 %v873_v28, %v1936_v18  ;;  %v1276_v57 = vpop.eup %1275  ;;  %v858_v58 = vmul.f32 %v1274_v61, %v656_v13 }
 0x1b8   : > { %v1278_v22 = vpop.eup %1277  ;;  %v807_v14 = vadd.f32 %v1938_v51, %v806_v53  ;;  %v859_v0 = vmul.f32 %v1276_v57, %v657_v12 }
 0x1b9   : > { %v875_v45 = vadd.f32 %v874_v37, %v1949_v35  ;;  %v1280_v21 = vpop.eup %1279  ;;  %v860_v63 = vmul.f32 %v1278_v22, %v658_v26 }
 0x1ba   : > { %v808_v24 = vadd.f32 %v1951_v20, %v807_v14  ;;  %v861_v46 = vmul.f32 %v1280_v21, %v659_v43 }
 0x1bb   : > { %v876_v7 = vadd.f32 %v875_v45, %v1956_v49 }
 0x1bc   : > { %v809_v38 = vadd.f32 %v1958_v40, %v808_v24 }
 0x1bd   : > { %v877_v2 = vadd.f32 %v876_v7, %v846_v29 }
 0x1be   : > { %v810_v33 = vadd.f32 %v1254_v41, %v809_v38 }
 0x1bf   : > { %v878_v18 = vadd.f32 %v877_v2, %v847_v31 }
 0x1c0   : > { %v811_v16 = vadd.f32 %v1256_v60, %v810_v33 }
 0x1c1   : > { %v879_v23 = vadd.f32 %v878_v18, %v848_v62 }
 0x1c2   : > { %v812_v3 = vadd.f32 %v1258_v27, %v811_v16 }
 0x1c3   : > { %v880_v52 = vadd.f32 %v879_v23, %v849_v48 }
 0x1c4   : > { %v813_v51 = vadd.f32 %v1260_v5, %v812_v3 }
 0x1c5   : > { %v881_v59 = vadd.f32 %v880_v52, %v850_v30 }
 0x1c6   : > { %v814_v4 = vadd.f32 %v1262_v39, %v813_v51 }
 0x1c7   : > { %v882_v35 = vadd.f32 %v881_v59, %v851_v47 }
 0x1c8   : > { %v815_v10 = vadd.f32 %v1264_v8, %v814_v4 }
 0x1c9   : > { %v883_v6 = vadd.f32 %v882_v35, %v852_v9 }
 0x1ca   : > { %v816_v44 = vadd.f32 %v1266_v11, %v815_v10 }
 0x1cb   : > { %v884_v20 = vadd.f32 %v883_v6, %v853_v17 }
 0x1cc   : > { %v817_v42 = vadd.f32 %v1268_v36, %v816_v44 }
 0x1cd   : > { %v885_v49 = vadd.f32 %v884_v20, %v854_v50 }
 0x1ce   : > { %v818_v19 = vadd.f32 %v1270_v25, %v817_v42 }
 0x1cf   : > { %v886_v54 = vadd.f32 %v885_v49, %v855_v55 }
 0x1d0   : > { %v819_v40 = vadd.f32 %v1272_v15, %v818_v19 }
 0x1d1   : > { %v887_v29 = vadd.f32 %v886_v54, %v856_v32 }
 0x1d2   : > { %v820_v41 = vadd.f32 %v1274_v61, %v819_v40 }
 0x1d3   : > { %v888_v31 = vadd.f32 %v887_v29, %v857_v1 }
 0x1d4   : > { %v821_v60 = vadd.f32 %v1276_v57, %v820_v41 }
 0x1d5   : > { %v889_v62 = vadd.f32 %v888_v31, %v858_v58 }
 0x1d6   : > { %v822_v27 = vadd.f32 %v1278_v22, %v821_v60 }
 0x1d7   : > { %v890_v48 = vadd.f32 %v889_v62, %v859_v0 }
 0x1d8   : > { %v823_v5 = vadd.f32 %v1280_v21, %v822_v27 }
 0x1d9   : > { %v891_v30 = vadd.f32 %v890_v48, %v860_v63 }
 0x1da   : > { %v824_v39 = vrot.slane %v823_v5, 4 }
 0x1db   : > { %v892_v47 = vadd.f32 %v891_v30, %v861_v46 }
 0x1dc   : > { %v825_v8 = vadd.f32 %v824_v39, %v823_v5 }
 0x1dd   : > { %v893_v9 = vrot.slane %v892_v47, 4 }
 0x1de   : > { %v826_v11 = vrot.slane %v825_v8, 2 }
 0x1df   : > { %v894_v17 = vadd.f32 %v893_v9, %v892_v47 }
 0x1e0   : > { %v827_v36 = vadd.f32 %v826_v11, %v825_v8 }
 0x1e1   : > { %v895_v50 = vrot.slane %v894_v17, 2 }
 0x1e2   : > { %v828_v13 = vrot.slane %v827_v36, 1 }
 0x1e3   : > { %v896_v12 = vadd.f32 %v895_v50, %v894_v17 }
 0x1e4   : > { %v829_v25 = vadd.f32 %v828_v13, %v827_v36 }
 0x1e5   : > { %v897_v56 = vrot.slane %v896_v12, 1 }
 0x1e6   : > { %1281 = vrcp.f32 %v829_v25 }
 0x1e7   : > { %v898_v55 = vadd.f32 %v897_v56, %v896_v12 }
 0x1f0   : > { %v1282_v28 = vpop.eup %1281 }
 0x1f1   : > { %v900_v15 = vmul.f32 %v1282_v28, %v898_v55 }
 0x1f3   : > { %901 = vst [vmem:[%s202_s9] sm:$0x1] %v900_v15 }
 0x1f4   : > { %1354 = shalt.err (!%p1351_p7)
}
 0x1f5   : > { %s1355_s30 = scalar_lea.hbm %s1998_s5, 16  ;;  %s1359_s7 = scalar_lea.hbm %s2045_s3, 32 }
 0x1f6   : > { %p1356_p9 = scmp.ne.s32.totalorder %s1998_s5, %s1355_s30  ;;  %p1360_p5 = scmp.lt.u32.totalorder %s1998_s5, %s2045_s3 }
 0x1f7   : > { %p1361_p11 = scmp.lt.u32.totalorder %s1359_s7, %s1355_s30  ;;  %p1363_p4 = scmp.lt.u32.totalorder %s1355_s30, %s1998_s5 }
 0x1f8   : > { %p1357_p1 = pnand %p1356_p9, %p1532_p12 }
 0x1f9   : > { %p1362_p2 = por %p1361_p11, %p1360_p5 }
 0x1fa   : > { %p1358_p0 = pneg %p1357_p1 }
 0x1fb   : > { %p1364_p6 = por %p1363_p4, %p1362_p2 }
 0x1fd   : > { %p1365_p8 = pnand %p1364_p6, %p1358_p0 }
 0x1ff   : > { %1368 = shalt.err (!%p1365_p8)
}
 0x200   : > { %1124 = dma.vmem_to_hbm [thread:$0]  (%p1532_p12), %s2000_s4, 16, %s1998_s5, %s903_s27  }
 0x201 PF: > { %s927_s18 = sand.u32 1, %s1399_s12   ;;  %p2093_p10 = scmp.ne.s32.totalorder %s2060_s19, 0 }
 0x202   : > { %p2094_p13 = scmp.ge.s32.totalorder %s1411_s15, 2  ;;  %s928_s20 = scalar_lea.sflag [#allocation4], %s927_s18 }
 0x204   : > { %p1135_p3 = pnand %p2094_p13, %p2093_p10 }
 0x206   : > { %1394 = dma.done.wait (!%p1135_p3), %s928_s20, 16  }
 0x207   : > { %1396 = vsyncadd (!%p1135_p3), %s928_s20, 4294967280  ;;  %p17_p7 = scmp.ge.s32.totalorder %s1494_s24, 4   ;;  %s2095_s12 = smov %s1403_s13 }
 0x208   : > { %s2096_s13 = smov %s1407_s14  ;;  %s2097_s14 = smov %s1528_s17 }
 0x209   : > { %s2098_s15 = smov %s1494_s24  ;;  %19 = sbr.rel (!%p17_p7) target bundleno = 6 (0x6), region = 81 }
 0x210   :  { %932 = vsyncpa [#allocation3], 1 }
 0x211   :  { %934 = vsyncpa [#allocation3 + $0x1], 1 }
 0x212   :  { %935 = vsyncpa [#allocation6], 1 }
 0x213   :  { %936 = vsyncpa [#allocation4], 1 }
 0x214   :  { %938 = vsyncpa [#allocation4 + $0x1], 1 }

</bundles_post_ra>
